<compile_context>
chip_gen: v6e
topology: v6e:2x2x1
jax: 0.10.0
libtpu: 0.0.40
codegen_flags: <defaults>
</compile_context>

<pallas_src>
import functools

import jax
import jax.numpy as jnp
from jax.experimental import pallas as pl
from jax.experimental.pallas import tpu as pltpu


LN_EPS = 1e-5
OUT_PAD = 128   # lane-dense padded output width
ROOTS_PAD = 8   # sublane-aligned max number of root nodes per forward


# ----------------------------- Fused Pallas kernel --------------------------

def _fused_gnn_kernel(root_ref, idx_ref, emb_ref, a_ref, w_ref, lnb_ref,
                      out_ref, log_ref):
    """Whole GraphModel forward for one (padded) graph, fully VMEM-resident.

    root_ref : (ROOTS_PAD,)      int32  SMEM  root node indices (pad = dup of 0)
    idx_ref  : (Np, 2)           int32  VMEM  node (key, value) token indices
    emb_ref  : (2, V, H)         f32    VMEM  stacked key / value embedding tables
    a_ref    : (Np, Np)          f32    VMEM  GCN-normalized adjacency (padded)
    w_ref    : (D+1, H, OUT_PAD) f32    VMEM  [i,:, :H] = layer-i W ; [D] = W_out
    lnb_ref  : (D, 3, H)         f32    VMEM  per-layer (bias, ln_gamma, ln_beta)
    out_ref  : (ROOTS_PAD, OUT_PAD) f32       logits at root rows (lane-dense)
    log_ref  : (Np, OUT_PAD)     f32    VMEM scratch: full logits
    """
    n_pad = idx_ref.shape[0]
    depth = lnb_ref.shape[0]
    vocab, h_dim = emb_ref.shape[1], emb_ref.shape[2]

    # --- Embedding: x = Emb_key(key) + Emb_val(val) as a VPU select-accumulate
    #     over the tiny vocab.  Tables loaded once (hoisted), sliced as values.
    idx = idx_ref[...]                            # (Np, 2)
    k_idx = idx[:, 0:1]                           # (Np, 1)
    v_idx = idx[:, 1:2]
    key_tab = emb_ref[0]                          # (V, H)
    val_tab = emb_ref[1]
    x = jnp.zeros((n_pad, h_dim), jnp.float32)
    for v in range(vocab):                        # vocab = in_dim + 1 = 5
        x = x + ((k_idx == v).astype(jnp.float32) * key_tab[v:v + 1, :]
                 + (v_idx == v).astype(jnp.float32) * val_tab[v:v + 1, :])

    a = a_ref[...]                                # (Np, Np) f32

    # --- depth x (GCNConv -> ReLU -> residual -> LayerNorm).  Reassociated to
    #     (A @ x) @ W; all f32 (MXU latency-trivial at this size, no downcasts).
    for i in range(depth):
        w = w_ref[i][:, :h_dim]                   # (H, H)       static slice
        ln = lnb_ref[i]                           # (3, H)
        b, gamma, beta = ln[0:1, :], ln[1:2, :], ln[2:3, :]
        ax = jnp.dot(a, x, preferred_element_type=jnp.float32)       # A @ x
        m = jnp.dot(ax, w, preferred_element_type=jnp.float32) + b   # (A x) W + b
        m = jnp.maximum(m, 0.0)                   # use_activation
        y = x + m                                 # use_residual
        mu = jnp.mean(y, axis=-1, keepdims=True)  # LayerNorm (eps = 1e-5)
        d = y - mu
        var = jnp.mean(d * d, axis=-1, keepdims=True)
        x = d * jax.lax.rsqrt(var + LN_EPS) * gamma + beta

    # --- Output projection (lane-dense, padded to 128 lanes) + in-kernel root
    #     gather: dynamic-row reads from the VMEM logits scratch, static-row
    #     writes into a small (8, 128) output.
    w_out = w_ref[depth]                          # (H, OUT_PAD)
    log_ref[...] = jnp.dot(x, w_out, preferred_element_type=jnp.float32)
    for r in range(out_ref.shape[0]):
        out_ref[pl.ds(r, 1), :] = log_ref[pl.ds(root_ref[r], 1), :]


# ----------------------------- Model wrapper --------------------------------

def init_params(key, in_dim, h_dim, out_dim, depth):
    vocab = in_dim + 1
    ks = jax.random.split(key, 4 + depth)
    params = {
        # nn.Embedding default init: N(0, 1)
        "key_tab": jax.random.normal(ks[0], (vocab, h_dim), jnp.float32),
        "val_tab": jax.random.normal(ks[1], (vocab, h_dim), jnp.float32),
        "layers": [],
        # out_layer: xavier_uniform_, bias=False; stored pre-transposed (H, out)
        "w_out": (jax.random.uniform(ks[2], (h_dim, out_dim), jnp.float32,
                                     -1.0, 1.0)
                  * jnp.sqrt(6.0 / (h_dim + out_dim))),
    }
    for i in range(depth):
        kw, kb = jax.random.split(ks[3 + i])
        lim = 1.0 / jnp.sqrt(h_dim)
        params["layers"].append({
            "w": jax.random.uniform(kw, (h_dim, h_dim), jnp.float32, -lim, lim),
            "b": jax.random.uniform(kb, (1, h_dim), jnp.float32, -lim, lim),
            "gamma": jnp.ones((1, h_dim), jnp.float32),
            "beta": jnp.zeros((1, h_dim), jnp.float32),
        })
    return params


def prepare_params(params, out_dim):
    """Consolidate parameters into 3 kernel operands (done once, off the hot
    path): stacked embedding tables, stacked weight slab (layers + W_out,
    lane-padded to 128), stacked (bias, gamma, beta)."""
    vocab, h_dim = params["key_tab"].shape
    depth = len(params["layers"])
    emb = jnp.stack([params["key_tab"], params["val_tab"]])          # (2, V, H)
    w_all = jnp.zeros((depth + 1, h_dim, OUT_PAD), jnp.float32)
    for i, l in enumerate(params["layers"]):
        w_all = w_all.at[i, :, :h_dim].set(l["w"])
    w_all = w_all.at[depth, :, :out_dim].set(params["w_out"])        # (D+1,H,128)
    lnb = jnp.stack([jnp.concatenate([l["b"], l["gamma"], l["beta"]], axis=0)
                     for l in params["layers"]])                     # (D, 3, H)
    return {"emb": emb, "w_all": w_all, "lnb": lnb}


def build_gcn_adjacency(edge_index, num_nodes, num_nodes_pad):
    """Dense A_hat = D^-1/2 (A + I) D^-1/2 with the *directed* edges as given
    (matches PyG GCNConv gcn_norm: deg = in-degree + self loop), zero-padded to
    num_nodes_pad so padded rows neither send nor receive messages.  Kept f32:
    at this size bf16 buys nothing and costs accuracy vs the torch reference."""
    src, dst = edge_index[0], edge_index[1]
    a = jnp.zeros((num_nodes, num_nodes), jnp.float32)
    a = a.at[dst, src].set(1.0)
    a = a + jnp.eye(num_nodes, dtype=jnp.float32)
    deg = jnp.sum(a, axis=1)
    d_inv_sqrt = jnp.where(deg > 0, 1.0 / jnp.sqrt(deg), 0.0)
    a_hat = a * d_inv_sqrt[:, None] * d_inv_sqrt[None, :]
    pad = num_nodes_pad - num_nodes
    return jnp.pad(a_hat, ((0, pad), (0, pad)))


@functools.partial(jax.jit, static_argnames=("num_roots", "out_dim"))
def graph_model_forward(prep, node_idx, a_hat, root_idx, *, num_roots, out_dim):
    """node_idx: (Np, 2) int32 (key, value); a_hat: (Np, Np) f32;
    root_idx: (ROOTS_PAD,) int32 (padded with duplicates of a valid root).
    Returns preds at roots: (num_roots, out_dim)."""
    n_pad = node_idx.shape[0]
    h_dim = prep["emb"].shape[2]
    depth = prep["lnb"].shape[0]

    flops = (depth * (2 * n_pad * n_pad * h_dim + 2 * n_pad * h_dim * h_dim)
             + 2 * n_pad * h_dim * out_dim)
    bytes_accessed = (sum(int(t.size) * t.dtype.itemsize for t in
                          (node_idx, a_hat, root_idx, prep["emb"],
                           prep["w_all"], prep["lnb"]))
                      + ROOTS_PAD * OUT_PAD * 4)

    vmem = pl.BlockSpec(memory_space=pltpu.MemorySpace.VMEM)
    smem = pl.BlockSpec(memory_space=pltpu.MemorySpace.SMEM)

    out = pl.pallas_call(
        _fused_gnn_kernel,
        out_shape=jax.ShapeDtypeStruct((ROOTS_PAD, OUT_PAD), jnp.float32),
        in_specs=[smem, vmem, vmem, vmem, vmem, vmem],
        out_specs=vmem,
        scratch_shapes=[pltpu.VMEM((n_pad, OUT_PAD), jnp.float32)],
        cost_estimate=pl.CostEstimate(flops=flops,
                                      transcendentals=depth * n_pad,
                                      bytes_accessed=bytes_accessed),
    )(root_idx, node_idx, prep["emb"], a_hat, prep["w_all"], prep["lnb"])

    # Root gather happens in-kernel; only a static slice remains here.
    return out[:num_roots, :out_dim]


# --------------------------------- Main --------------------------------------

if __name__ == "__main__":
    N = 15          # nodes of a small binary tree
    IN_DIM = 4      # -> embedding vocab = 5
    H_DIM = 32
    OUT_DIM = 8
    DEPTH = 3
    N_PAD = -(-N // 8) * 8   # sublane-align the node dim (15 -> 16)

    key = jax.random.PRNGKey(0)
    k_param, k_feat = jax.random.split(key)

    params = init_params(k_param, IN_DIM, H_DIM, OUT_DIM, DEPTH)
    prep = prepare_params(params, OUT_DIM)

    # Binary-tree edges: child -> parent (Tree/bottleneck benchmark convention).
    src, dst = [], []
    for child in range(1, N):
        parent = (child - 1) // 2
        src.append(child)
        dst.append(parent)
    edge_index = jnp.array([src, dst], dtype=jnp.int32)

    # Node features: (key, value) integer pairs in [0, IN_DIM], padded to N_PAD
    # (padded rows never interact: their adjacency rows/cols are zero).
    x_int = jax.random.randint(k_feat, (N, 2), 0, IN_DIM + 1, dtype=jnp.int32)
    node_idx = jnp.zeros((N_PAD, 2), jnp.int32).at[:N, :].set(x_int)

    # Adjacency hoisted out of the per-forward hot path.
    a_hat = build_gcn_adjacency(edge_index, N, N_PAD)

    # Root indices, padded to ROOTS_PAD (padding duplicates the root; the
    # wrapper slices back to the true root count).  Only node 0 is a root.
    root_idx = jnp.zeros((ROOTS_PAD,), jnp.int32)

    preds = graph_model_forward(prep, node_idx, a_hat, root_idx,
                                num_roots=1, out_dim=OUT_DIM)
    preds = jax.block_until_ready(preds)

    assert preds.shape == (1, OUT_DIM)
    assert preds.dtype == jnp.float32
    assert bool(jnp.all(jnp.isfinite(preds)))
    print("KERNEL_OK")
</pallas_src>

<mosaic_0001>
module attributes {stable_mosaic.version = 11 : i64} {
  func.func @_fused_gnn_kernel(%arg0: memref<8xi32, #tpu.memory_space<smem>>, %arg1: memref<16x2xi32, #tpu.memory_space<vmem>>, %arg2: memref<2x5x32xf32, #tpu.memory_space<vmem>>, %arg3: memref<16x16xf32, #tpu.memory_space<vmem>>, %arg4: memref<4x32x128xf32, #tpu.memory_space<vmem>>, %arg5: memref<3x3x32xf32, #tpu.memory_space<vmem>>, %arg6: memref<8x128xf32, #tpu.memory_space<vmem>>, %arg7: memref<16x128xf32, #tpu.memory_space<vmem>>) attributes {dimension_semantics = [], scalar_prefetch = 0 : i64, scratch_operands = 1 : i64, tpu.core_type = #tpu.core_type<tc>} {
    %c0 = arith.constant 0 : index
    %c0_0 = arith.constant 0 : index
    %0 = vector.load %arg1[%c0, %c0_0] : memref<16x2xi32, #tpu.memory_space<vmem>>, vector<16x2xi32>
    %1 = vector.extract_strided_slice %0 {offsets = [0, 0], sizes = [16, 1], strides = [1, 1]} : vector<16x2xi32> to vector<16x1xi32>
    %2 = vector.extract_strided_slice %0 {offsets = [0, 1], sizes = [16, 1], strides = [1, 1]} : vector<16x2xi32> to vector<16x1xi32>
    %c0_1 = arith.constant 0 : index
    %c0_2 = arith.constant 0 : index
    %c0_3 = arith.constant 0 : index
    %3 = vector.load %arg2[%c0_1, %c0_2, %c0_3] : memref<2x5x32xf32, #tpu.memory_space<vmem>>, vector<1x5x32xf32>
    %4 = vector.shape_cast %3 : vector<1x5x32xf32> to vector<5x32xf32>
    %c1 = arith.constant 1 : index
    %c0_4 = arith.constant 0 : index
    %c0_5 = arith.constant 0 : index
    %5 = vector.load %arg2[%c1, %c0_4, %c0_5] : memref<2x5x32xf32, #tpu.memory_space<vmem>>, vector<1x5x32xf32>
    %6 = vector.shape_cast %5 : vector<1x5x32xf32> to vector<5x32xf32>
    %cst = arith.constant 0.000000e+00 : f32
    %7 = vector.broadcast %cst : f32 to vector<16x32xf32>
    %c0_i32 = arith.constant 0 : i32
    %8 = vector.broadcast %c0_i32 : i32 to vector<16x1xi32>
    %9 = arith.cmpi eq, %1, %8 : vector<16x1xi32>
    %10 = arith.extui %9 : vector<16x1xi1> to vector<16x1xi32>
    %11 = arith.sitofp %10 : vector<16x1xi32> to vector<16x1xf32>
    %12 = vector.extract_strided_slice %4 {offsets = [0, 0], sizes = [1, 32], strides = [1, 1]} : vector<5x32xf32> to vector<1x32xf32>
    %13 = vector.broadcast %11 : vector<16x1xf32> to vector<16x32xf32>
    %14 = vector.broadcast %12 : vector<1x32xf32> to vector<16x32xf32>
    %15 = arith.mulf %13, %14 : vector<16x32xf32>
    %c0_i32_6 = arith.constant 0 : i32
    %16 = vector.broadcast %c0_i32_6 : i32 to vector<16x1xi32>
    %17 = arith.cmpi eq, %2, %16 : vector<16x1xi32>
    %18 = arith.extui %17 : vector<16x1xi1> to vector<16x1xi32>
    %19 = arith.sitofp %18 : vector<16x1xi32> to vector<16x1xf32>
    %20 = vector.extract_strided_slice %6 {offsets = [0, 0], sizes = [1, 32], strides = [1, 1]} : vector<5x32xf32> to vector<1x32xf32>
    %21 = vector.broadcast %19 : vector<16x1xf32> to vector<16x32xf32>
    %22 = vector.broadcast %20 : vector<1x32xf32> to vector<16x32xf32>
    %23 = arith.mulf %21, %22 : vector<16x32xf32>
    %24 = arith.addf %15, %23 : vector<16x32xf32>
    %25 = arith.addf %7, %24 : vector<16x32xf32>
    %c1_i32 = arith.constant 1 : i32
    %26 = vector.broadcast %c1_i32 : i32 to vector<16x1xi32>
    %27 = arith.cmpi eq, %1, %26 : vector<16x1xi32>
    %28 = arith.extui %27 : vector<16x1xi1> to vector<16x1xi32>
    %29 = arith.sitofp %28 : vector<16x1xi32> to vector<16x1xf32>
    %30 = vector.extract_strided_slice %4 {offsets = [1, 0], sizes = [1, 32], strides = [1, 1]} : vector<5x32xf32> to vector<1x32xf32>
    %31 = vector.broadcast %29 : vector<16x1xf32> to vector<16x32xf32>
    %32 = vector.broadcast %30 : vector<1x32xf32> to vector<16x32xf32>
    %33 = arith.mulf %31, %32 : vector<16x32xf32>
    %c1_i32_7 = arith.constant 1 : i32
    %34 = vector.broadcast %c1_i32_7 : i32 to vector<16x1xi32>
    %35 = arith.cmpi eq, %2, %34 : vector<16x1xi32>
    %36 = arith.extui %35 : vector<16x1xi1> to vector<16x1xi32>
    %37 = arith.sitofp %36 : vector<16x1xi32> to vector<16x1xf32>
    %38 = vector.extract_strided_slice %6 {offsets = [1, 0], sizes = [1, 32], strides = [1, 1]} : vector<5x32xf32> to vector<1x32xf32>
    %39 = vector.broadcast %37 : vector<16x1xf32> to vector<16x32xf32>
    %40 = vector.broadcast %38 : vector<1x32xf32> to vector<16x32xf32>
    %41 = arith.mulf %39, %40 : vector<16x32xf32>
    %42 = arith.addf %33, %41 : vector<16x32xf32>
    %43 = arith.addf %25, %42 : vector<16x32xf32>
    %c2_i32 = arith.constant 2 : i32
    %44 = vector.broadcast %c2_i32 : i32 to vector<16x1xi32>
    %45 = arith.cmpi eq, %1, %44 : vector<16x1xi32>
    %46 = arith.extui %45 : vector<16x1xi1> to vector<16x1xi32>
    %47 = arith.sitofp %46 : vector<16x1xi32> to vector<16x1xf32>
    %48 = vector.extract_strided_slice %4 {offsets = [2, 0], sizes = [1, 32], strides = [1, 1]} : vector<5x32xf32> to vector<1x32xf32>
    %49 = vector.broadcast %47 : vector<16x1xf32> to vector<16x32xf32>
    %50 = vector.broadcast %48 : vector<1x32xf32> to vector<16x32xf32>
    %51 = arith.mulf %49, %50 : vector<16x32xf32>
    %c2_i32_8 = arith.constant 2 : i32
    %52 = vector.broadcast %c2_i32_8 : i32 to vector<16x1xi32>
    %53 = arith.cmpi eq, %2, %52 : vector<16x1xi32>
    %54 = arith.extui %53 : vector<16x1xi1> to vector<16x1xi32>
    %55 = arith.sitofp %54 : vector<16x1xi32> to vector<16x1xf32>
    %56 = vector.extract_strided_slice %6 {offsets = [2, 0], sizes = [1, 32], strides = [1, 1]} : vector<5x32xf32> to vector<1x32xf32>
    %57 = vector.broadcast %55 : vector<16x1xf32> to vector<16x32xf32>
    %58 = vector.broadcast %56 : vector<1x32xf32> to vector<16x32xf32>
    %59 = arith.mulf %57, %58 : vector<16x32xf32>
    %60 = arith.addf %51, %59 : vector<16x32xf32>
    %61 = arith.addf %43, %60 : vector<16x32xf32>
    %c3_i32 = arith.constant 3 : i32
    %62 = vector.broadcast %c3_i32 : i32 to vector<16x1xi32>
    %63 = arith.cmpi eq, %1, %62 : vector<16x1xi32>
    %64 = arith.extui %63 : vector<16x1xi1> to vector<16x1xi32>
    %65 = arith.sitofp %64 : vector<16x1xi32> to vector<16x1xf32>
    %66 = vector.extract_strided_slice %4 {offsets = [3, 0], sizes = [1, 32], strides = [1, 1]} : vector<5x32xf32> to vector<1x32xf32>
    %67 = vector.broadcast %65 : vector<16x1xf32> to vector<16x32xf32>
    %68 = vector.broadcast %66 : vector<1x32xf32> to vector<16x32xf32>
    %69 = arith.mulf %67, %68 : vector<16x32xf32>
    %c3_i32_9 = arith.constant 3 : i32
    %70 = vector.broadcast %c3_i32_9 : i32 to vector<16x1xi32>
    %71 = arith.cmpi eq, %2, %70 : vector<16x1xi32>
    %72 = arith.extui %71 : vector<16x1xi1> to vector<16x1xi32>
    %73 = arith.sitofp %72 : vector<16x1xi32> to vector<16x1xf32>
    %74 = vector.extract_strided_slice %6 {offsets = [3, 0], sizes = [1, 32], strides = [1, 1]} : vector<5x32xf32> to vector<1x32xf32>
    %75 = vector.broadcast %73 : vector<16x1xf32> to vector<16x32xf32>
    %76 = vector.broadcast %74 : vector<1x32xf32> to vector<16x32xf32>
    %77 = arith.mulf %75, %76 : vector<16x32xf32>
    %78 = arith.addf %69, %77 : vector<16x32xf32>
    %79 = arith.addf %61, %78 : vector<16x32xf32>
    %c4_i32 = arith.constant 4 : i32
    %80 = vector.broadcast %c4_i32 : i32 to vector<16x1xi32>
    %81 = arith.cmpi eq, %1, %80 : vector<16x1xi32>
    %82 = arith.extui %81 : vector<16x1xi1> to vector<16x1xi32>
    %83 = arith.sitofp %82 : vector<16x1xi32> to vector<16x1xf32>
    %84 = vector.extract_strided_slice %4 {offsets = [4, 0], sizes = [1, 32], strides = [1, 1]} : vector<5x32xf32> to vector<1x32xf32>
    %85 = vector.broadcast %83 : vector<16x1xf32> to vector<16x32xf32>
    %86 = vector.broadcast %84 : vector<1x32xf32> to vector<16x32xf32>
    %87 = arith.mulf %85, %86 : vector<16x32xf32>
    %c4_i32_10 = arith.constant 4 : i32
    %88 = vector.broadcast %c4_i32_10 : i32 to vector<16x1xi32>
    %89 = arith.cmpi eq, %2, %88 : vector<16x1xi32>
    %90 = arith.extui %89 : vector<16x1xi1> to vector<16x1xi32>
    %91 = arith.sitofp %90 : vector<16x1xi32> to vector<16x1xf32>
    %92 = vector.extract_strided_slice %6 {offsets = [4, 0], sizes = [1, 32], strides = [1, 1]} : vector<5x32xf32> to vector<1x32xf32>
    %93 = vector.broadcast %91 : vector<16x1xf32> to vector<16x32xf32>
    %94 = vector.broadcast %92 : vector<1x32xf32> to vector<16x32xf32>
    %95 = arith.mulf %93, %94 : vector<16x32xf32>
    %96 = arith.addf %87, %95 : vector<16x32xf32>
    %97 = arith.addf %79, %96 : vector<16x32xf32>
    %c0_11 = arith.constant 0 : index
    %c0_12 = arith.constant 0 : index
    %98 = vector.load %arg3[%c0_11, %c0_12] : memref<16x16xf32, #tpu.memory_space<vmem>>, vector<16x16xf32>
    %c0_13 = arith.constant 0 : index
    %c0_14 = arith.constant 0 : index
    %c0_15 = arith.constant 0 : index
    %99 = vector.load %arg4[%c0_13, %c0_14, %c0_15] : memref<4x32x128xf32, #tpu.memory_space<vmem>>, vector<1x32x128xf32>
    %100 = vector.shape_cast %99 : vector<1x32x128xf32> to vector<32x128xf32>
    %101 = vector.extract_strided_slice %100 {offsets = [0, 0], sizes = [32, 32], strides = [1, 1]} : vector<32x128xf32> to vector<32x32xf32>
    %c0_16 = arith.constant 0 : index
    %c0_17 = arith.constant 0 : index
    %c0_18 = arith.constant 0 : index
    %102 = vector.load %arg5[%c0_16, %c0_17, %c0_18] : memref<3x3x32xf32, #tpu.memory_space<vmem>>, vector<1x3x32xf32>
    %103 = vector.shape_cast %102 : vector<1x3x32xf32> to vector<3x32xf32>
    %104 = vector.extract_strided_slice %103 {offsets = [0, 0], sizes = [1, 32], strides = [1, 1]} : vector<3x32xf32> to vector<1x32xf32>
    %105 = vector.extract_strided_slice %103 {offsets = [1, 0], sizes = [1, 32], strides = [1, 1]} : vector<3x32xf32> to vector<1x32xf32>
    %106 = vector.extract_strided_slice %103 {offsets = [2, 0], sizes = [1, 32], strides = [1, 1]} : vector<3x32xf32> to vector<1x32xf32>
    %cst_19 = arith.constant dense<0.000000e+00> : vector<16x32xf32>
    %107 = tpu.matmul %98, %97, %cst_19 {dimension_numbers = #tpu.dot_dimension_numbers<[1], [0], [0], [1], [0, 0, 1, 1], [], []>} : vector<16x16xf32>, vector<16x32xf32>, vector<16x32xf32> -> vector<16x32xf32>
    %cst_20 = arith.constant dense<0.000000e+00> : vector<16x32xf32>
    %108 = tpu.matmul %107, %101, %cst_20 {dimension_numbers = #tpu.dot_dimension_numbers<[1], [0], [0], [1], [0, 0, 1, 1], [], []>} : vector<16x32xf32>, vector<32x32xf32>, vector<16x32xf32> -> vector<16x32xf32>
    %109 = vector.broadcast %104 : vector<1x32xf32> to vector<16x32xf32>
    %110 = arith.addf %108, %109 : vector<16x32xf32>
    %cst_21 = arith.constant 0.000000e+00 : f32
    %111 = vector.broadcast %cst_21 : f32 to vector<16x32xf32>
    %112 = arith.maximumf %110, %111 : vector<16x32xf32>
    %113 = arith.addf %97, %112 : vector<16x32xf32>
    %cst_22 = arith.constant dense<0.000000e+00> : vector<16xf32>
    %114 = vector.multi_reduction <add>, %113, %cst_22 [1] : vector<16x32xf32> to vector<16xf32>
    %115 = vector.shape_cast %114 : vector<16xf32> to vector<16x1xf32>
    %cst_23 = arith.constant 3.200000e+01 : f32
    %116 = vector.broadcast %cst_23 : f32 to vector<16x1xf32>
    %117 = arith.divf %115, %116 : vector<16x1xf32>
    %118 = vector.broadcast %117 : vector<16x1xf32> to vector<16x32xf32>
    %119 = arith.subf %113, %118 : vector<16x32xf32>
    %120 = arith.mulf %119, %119 : vector<16x32xf32>
    %cst_24 = arith.constant dense<0.000000e+00> : vector<16xf32>
    %121 = vector.multi_reduction <add>, %120, %cst_24 [1] : vector<16x32xf32> to vector<16xf32>
    %122 = vector.shape_cast %121 : vector<16xf32> to vector<16x1xf32>
    %cst_25 = arith.constant 3.200000e+01 : f32
    %123 = vector.broadcast %cst_25 : f32 to vector<16x1xf32>
    %124 = arith.divf %122, %123 : vector<16x1xf32>
    %cst_26 = arith.constant 9.99999974E-6 : f32
    %125 = vector.broadcast %cst_26 : f32 to vector<16x1xf32>
    %126 = arith.addf %124, %125 : vector<16x1xf32>
    %127 = math.rsqrt %126 : vector<16x1xf32>
    %128 = vector.broadcast %127 : vector<16x1xf32> to vector<16x32xf32>
    %129 = arith.mulf %119, %128 : vector<16x32xf32>
    %130 = vector.broadcast %105 : vector<1x32xf32> to vector<16x32xf32>
    %131 = arith.mulf %129, %130 : vector<16x32xf32>
    %132 = vector.broadcast %106 : vector<1x32xf32> to vector<16x32xf32>
    %133 = arith.addf %131, %132 : vector<16x32xf32>
    %c1_27 = arith.constant 1 : index
    %c0_28 = arith.constant 0 : index
    %c0_29 = arith.constant 0 : index
    %134 = vector.load %arg4[%c1_27, %c0_28, %c0_29] : memref<4x32x128xf32, #tpu.memory_space<vmem>>, vector<1x32x128xf32>
    %135 = vector.shape_cast %134 : vector<1x32x128xf32> to vector<32x128xf32>
    %136 = vector.extract_strided_slice %135 {offsets = [0, 0], sizes = [32, 32], strides = [1, 1]} : vector<32x128xf32> to vector<32x32xf32>
    %c1_30 = arith.constant 1 : index
    %c0_31 = arith.constant 0 : index
    %c0_32 = arith.constant 0 : index
    %137 = vector.load %arg5[%c1_30, %c0_31, %c0_32] : memref<3x3x32xf32, #tpu.memory_space<vmem>>, vector<1x3x32xf32>
    %138 = vector.shape_cast %137 : vector<1x3x32xf32> to vector<3x32xf32>
    %139 = vector.extract_strided_slice %138 {offsets = [0, 0], sizes = [1, 32], strides = [1, 1]} : vector<3x32xf32> to vector<1x32xf32>
    %140 = vector.extract_strided_slice %138 {offsets = [1, 0], sizes = [1, 32], strides = [1, 1]} : vector<3x32xf32> to vector<1x32xf32>
    %141 = vector.extract_strided_slice %138 {offsets = [2, 0], sizes = [1, 32], strides = [1, 1]} : vector<3x32xf32> to vector<1x32xf32>
    %cst_33 = arith.constant dense<0.000000e+00> : vector<16x32xf32>
    %142 = tpu.matmul %98, %133, %cst_33 {dimension_numbers = #tpu.dot_dimension_numbers<[1], [0], [0], [1], [0, 0, 1, 1], [], []>} : vector<16x16xf32>, vector<16x32xf32>, vector<16x32xf32> -> vector<16x32xf32>
    %cst_34 = arith.constant dense<0.000000e+00> : vector<16x32xf32>
    %143 = tpu.matmul %142, %136, %cst_34 {dimension_numbers = #tpu.dot_dimension_numbers<[1], [0], [0], [1], [0, 0, 1, 1], [], []>} : vector<16x32xf32>, vector<32x32xf32>, vector<16x32xf32> -> vector<16x32xf32>
    %144 = vector.broadcast %139 : vector<1x32xf32> to vector<16x32xf32>
    %145 = arith.addf %143, %144 : vector<16x32xf32>
    %cst_35 = arith.constant 0.000000e+00 : f32
    %146 = vector.broadcast %cst_35 : f32 to vector<16x32xf32>
    %147 = arith.maximumf %145, %146 : vector<16x32xf32>
    %148 = arith.addf %133, %147 : vector<16x32xf32>
    %cst_36 = arith.constant dense<0.000000e+00> : vector<16xf32>
    %149 = vector.multi_reduction <add>, %148, %cst_36 [1] : vector<16x32xf32> to vector<16xf32>
    %150 = vector.shape_cast %149 : vector<16xf32> to vector<16x1xf32>
    %cst_37 = arith.constant 3.200000e+01 : f32
    %151 = vector.broadcast %cst_37 : f32 to vector<16x1xf32>
    %152 = arith.divf %150, %151 : vector<16x1xf32>
    %153 = vector.broadcast %152 : vector<16x1xf32> to vector<16x32xf32>
    %154 = arith.subf %148, %153 : vector<16x32xf32>
    %155 = arith.mulf %154, %154 : vector<16x32xf32>
    %cst_38 = arith.constant dense<0.000000e+00> : vector<16xf32>
    %156 = vector.multi_reduction <add>, %155, %cst_38 [1] : vector<16x32xf32> to vector<16xf32>
    %157 = vector.shape_cast %156 : vector<16xf32> to vector<16x1xf32>
    %cst_39 = arith.constant 3.200000e+01 : f32
    %158 = vector.broadcast %cst_39 : f32 to vector<16x1xf32>
    %159 = arith.divf %157, %158 : vector<16x1xf32>
    %cst_40 = arith.constant 9.99999974E-6 : f32
    %160 = vector.broadcast %cst_40 : f32 to vector<16x1xf32>
    %161 = arith.addf %159, %160 : vector<16x1xf32>
    %162 = math.rsqrt %161 : vector<16x1xf32>
    %163 = vector.broadcast %162 : vector<16x1xf32> to vector<16x32xf32>
    %164 = arith.mulf %154, %163 : vector<16x32xf32>
    %165 = vector.broadcast %140 : vector<1x32xf32> to vector<16x32xf32>
    %166 = arith.mulf %164, %165 : vector<16x32xf32>
    %167 = vector.broadcast %141 : vector<1x32xf32> to vector<16x32xf32>
    %168 = arith.addf %166, %167 : vector<16x32xf32>
    %c2 = arith.constant 2 : index
    %c0_41 = arith.constant 0 : index
    %c0_42 = arith.constant 0 : index
    %169 = vector.load %arg4[%c2, %c0_41, %c0_42] : memref<4x32x128xf32, #tpu.memory_space<vmem>>, vector<1x32x128xf32>
    %170 = vector.shape_cast %169 : vector<1x32x128xf32> to vector<32x128xf32>
    %171 = vector.extract_strided_slice %170 {offsets = [0, 0], sizes = [32, 32], strides = [1, 1]} : vector<32x128xf32> to vector<32x32xf32>
    %c2_43 = arith.constant 2 : index
    %c0_44 = arith.constant 0 : index
    %c0_45 = arith.constant 0 : index
    %172 = vector.load %arg5[%c2_43, %c0_44, %c0_45] : memref<3x3x32xf32, #tpu.memory_space<vmem>>, vector<1x3x32xf32>
    %173 = vector.shape_cast %172 : vector<1x3x32xf32> to vector<3x32xf32>
    %174 = vector.extract_strided_slice %173 {offsets = [0, 0], sizes = [1, 32], strides = [1, 1]} : vector<3x32xf32> to vector<1x32xf32>
    %175 = vector.extract_strided_slice %173 {offsets = [1, 0], sizes = [1, 32], strides = [1, 1]} : vector<3x32xf32> to vector<1x32xf32>
    %176 = vector.extract_strided_slice %173 {offsets = [2, 0], sizes = [1, 32], strides = [1, 1]} : vector<3x32xf32> to vector<1x32xf32>
    %cst_46 = arith.constant dense<0.000000e+00> : vector<16x32xf32>
    %177 = tpu.matmul %98, %168, %cst_46 {dimension_numbers = #tpu.dot_dimension_numbers<[1], [0], [0], [1], [0, 0, 1, 1], [], []>} : vector<16x16xf32>, vector<16x32xf32>, vector<16x32xf32> -> vector<16x32xf32>
    %cst_47 = arith.constant dense<0.000000e+00> : vector<16x32xf32>
    %178 = tpu.matmul %177, %171, %cst_47 {dimension_numbers = #tpu.dot_dimension_numbers<[1], [0], [0], [1], [0, 0, 1, 1], [], []>} : vector<16x32xf32>, vector<32x32xf32>, vector<16x32xf32> -> vector<16x32xf32>
    %179 = vector.broadcast %174 : vector<1x32xf32> to vector<16x32xf32>
    %180 = arith.addf %178, %179 : vector<16x32xf32>
    %cst_48 = arith.constant 0.000000e+00 : f32
    %181 = vector.broadcast %cst_48 : f32 to vector<16x32xf32>
    %182 = arith.maximumf %180, %181 : vector<16x32xf32>
    %183 = arith.addf %168, %182 : vector<16x32xf32>
    %cst_49 = arith.constant dense<0.000000e+00> : vector<16xf32>
    %184 = vector.multi_reduction <add>, %183, %cst_49 [1] : vector<16x32xf32> to vector<16xf32>
    %185 = vector.shape_cast %184 : vector<16xf32> to vector<16x1xf32>
    %cst_50 = arith.constant 3.200000e+01 : f32
    %186 = vector.broadcast %cst_50 : f32 to vector<16x1xf32>
    %187 = arith.divf %185, %186 : vector<16x1xf32>
    %188 = vector.broadcast %187 : vector<16x1xf32> to vector<16x32xf32>
    %189 = arith.subf %183, %188 : vector<16x32xf32>
    %190 = arith.mulf %189, %189 : vector<16x32xf32>
    %cst_51 = arith.constant dense<0.000000e+00> : vector<16xf32>
    %191 = vector.multi_reduction <add>, %190, %cst_51 [1] : vector<16x32xf32> to vector<16xf32>
    %192 = vector.shape_cast %191 : vector<16xf32> to vector<16x1xf32>
    %cst_52 = arith.constant 3.200000e+01 : f32
    %193 = vector.broadcast %cst_52 : f32 to vector<16x1xf32>
    %194 = arith.divf %192, %193 : vector<16x1xf32>
    %cst_53 = arith.constant 9.99999974E-6 : f32
    %195 = vector.broadcast %cst_53 : f32 to vector<16x1xf32>
    %196 = arith.addf %194, %195 : vector<16x1xf32>
    %197 = math.rsqrt %196 : vector<16x1xf32>
    %198 = vector.broadcast %197 : vector<16x1xf32> to vector<16x32xf32>
    %199 = arith.mulf %189, %198 : vector<16x32xf32>
    %200 = vector.broadcast %175 : vector<1x32xf32> to vector<16x32xf32>
    %201 = arith.mulf %199, %200 : vector<16x32xf32>
    %202 = vector.broadcast %176 : vector<1x32xf32> to vector<16x32xf32>
    %203 = arith.addf %201, %202 : vector<16x32xf32>
    %c3 = arith.constant 3 : index
    %c0_54 = arith.constant 0 : index
    %c0_55 = arith.constant 0 : index
    %204 = vector.load %arg4[%c3, %c0_54, %c0_55] : memref<4x32x128xf32, #tpu.memory_space<vmem>>, vector<1x32x128xf32>
    %205 = vector.shape_cast %204 : vector<1x32x128xf32> to vector<32x128xf32>
    %cst_56 = arith.constant dense<0.000000e+00> : vector<16x128xf32>
    %206 = tpu.matmul %203, %205, %cst_56 {dimension_numbers = #tpu.dot_dimension_numbers<[1], [0], [0], [1], [0, 0, 1, 1], [], []>} : vector<16x32xf32>, vector<32x128xf32>, vector<16x128xf32> -> vector<16x128xf32>
    %c0_57 = arith.constant 0 : index
    %c0_58 = arith.constant 0 : index
    %207 = vector.load %arg7[%c0_57, %c0_58] : memref<16x128xf32, #tpu.memory_space<vmem>>, vector<16x128xf32>
    tpu.vector_store %arg7[%c0_57, %c0_58], %206 {strides = array<i32>} : memref<16x128xf32, #tpu.memory_space<vmem>>, vector<16x128xf32>,
    %c0_59 = arith.constant 0 : index
    %208 = memref.load %arg0[%c0_59] : memref<8xi32, #tpu.memory_space<smem>>
    %209 = arith.index_cast %208 : i32 to index
    %c0_60 = arith.constant 0 : index
    %210 = vector.load %arg7[%209, %c0_60] : memref<16x128xf32, #tpu.memory_space<vmem>>, vector<1x128xf32>
    %c0_61 = arith.constant 0 : index
    %c0_62 = arith.constant 0 : index
    %211 = vector.load %arg6[%c0_61, %c0_62] : memref<8x128xf32, #tpu.memory_space<vmem>>, vector<1x128xf32>
    tpu.vector_store %arg6[%c0_61, %c0_62], %210 {strides = array<i32>} : memref<8x128xf32, #tpu.memory_space<vmem>>, vector<1x128xf32>,
    %c1_63 = arith.constant 1 : index
    %212 = memref.load %arg0[%c1_63] : memref<8xi32, #tpu.memory_space<smem>>
    %213 = arith.index_cast %212 : i32 to index
    %c0_64 = arith.constant 0 : index
    %214 = vector.load %arg7[%213, %c0_64] : memref<16x128xf32, #tpu.memory_space<vmem>>, vector<1x128xf32>
    %c1_65 = arith.constant 1 : index
    %c0_66 = arith.constant 0 : index
    %215 = vector.load %arg6[%c1_65, %c0_66] : memref<8x128xf32, #tpu.memory_space<vmem>>, vector<1x128xf32>
    tpu.vector_store %arg6[%c1_65, %c0_66], %214 {strides = array<i32>} : memref<8x128xf32, #tpu.memory_space<vmem>>, vector<1x128xf32>,
    %c2_67 = arith.constant 2 : index
    %216 = memref.load %arg0[%c2_67] : memref<8xi32, #tpu.memory_space<smem>>
    %217 = arith.index_cast %216 : i32 to index
    %c0_68 = arith.constant 0 : index
    %218 = vector.load %arg7[%217, %c0_68] : memref<16x128xf32, #tpu.memory_space<vmem>>, vector<1x128xf32>
    %c2_69 = arith.constant 2 : index
    %c0_70 = arith.constant 0 : index
    %219 = vector.load %arg6[%c2_69, %c0_70] : memref<8x128xf32, #tpu.memory_space<vmem>>, vector<1x128xf32>
    tpu.vector_store %arg6[%c2_69, %c0_70], %218 {strides = array<i32>} : memref<8x128xf32, #tpu.memory_space<vmem>>, vector<1x128xf32>,
    %c3_71 = arith.constant 3 : index
    %220 = memref.load %arg0[%c3_71] : memref<8xi32, #tpu.memory_space<smem>>
    %221 = arith.index_cast %220 : i32 to index
    %c0_72 = arith.constant 0 : index
    %222 = vector.load %arg7[%221, %c0_72] : memref<16x128xf32, #tpu.memory_space<vmem>>, vector<1x128xf32>
    %c3_73 = arith.constant 3 : index
    %c0_74 = arith.constant 0 : index
    %223 = vector.load %arg6[%c3_73, %c0_74] : memref<8x128xf32, #tpu.memory_space<vmem>>, vector<1x128xf32>
    tpu.vector_store %arg6[%c3_73, %c0_74], %222 {strides = array<i32>} : memref<8x128xf32, #tpu.memory_space<vmem>>, vector<1x128xf32>,
    %c4 = arith.constant 4 : index
    %224 = memref.load %arg0[%c4] : memref<8xi32, #tpu.memory_space<smem>>
    %225 = arith.index_cast %224 : i32 to index
    %c0_75 = arith.constant 0 : index
    %226 = vector.load %arg7[%225, %c0_75] : memref<16x128xf32, #tpu.memory_space<vmem>>, vector<1x128xf32>
    %c4_76 = arith.constant 4 : index
    %c0_77 = arith.constant 0 : index
    %227 = vector.load %arg6[%c4_76, %c0_77] : memref<8x128xf32, #tpu.memory_space<vmem>>, vector<1x128xf32>
    tpu.vector_store %arg6[%c4_76, %c0_77], %226 {strides = array<i32>} : memref<8x128xf32, #tpu.memory_space<vmem>>, vector<1x128xf32>,
    %c5 = arith.constant 5 : index
    %228 = memref.load %arg0[%c5] : memref<8xi32, #tpu.memory_space<smem>>
    %229 = arith.index_cast %228 : i32 to index
    %c0_78 = arith.constant 0 : index
    %230 = vector.load %arg7[%229, %c0_78] : memref<16x128xf32, #tpu.memory_space<vmem>>, vector<1x128xf32>
    %c5_79 = arith.constant 5 : index
    %c0_80 = arith.constant 0 : index
    %231 = vector.load %arg6[%c5_79, %c0_80] : memref<8x128xf32, #tpu.memory_space<vmem>>, vector<1x128xf32>
    tpu.vector_store %arg6[%c5_79, %c0_80], %230 {strides = array<i32>} : memref<8x128xf32, #tpu.memory_space<vmem>>, vector<1x128xf32>,
    %c6 = arith.constant 6 : index
    %232 = memref.load %arg0[%c6] : memref<8xi32, #tpu.memory_space<smem>>
    %233 = arith.index_cast %232 : i32 to index
    %c0_81 = arith.constant 0 : index
    %234 = vector.load %arg7[%233, %c0_81] : memref<16x128xf32, #tpu.memory_space<vmem>>, vector<1x128xf32>
    %c6_82 = arith.constant 6 : index
    %c0_83 = arith.constant 0 : index
    %235 = vector.load %arg6[%c6_82, %c0_83] : memref<8x128xf32, #tpu.memory_space<vmem>>, vector<1x128xf32>
    tpu.vector_store %arg6[%c6_82, %c0_83], %234 {strides = array<i32>} : memref<8x128xf32, #tpu.memory_space<vmem>>, vector<1x128xf32>,
    %c7 = arith.constant 7 : index
    %236 = memref.load %arg0[%c7] : memref<8xi32, #tpu.memory_space<smem>>
    %237 = arith.index_cast %236 : i32 to index
    %c0_84 = arith.constant 0 : index
    %238 = vector.load %arg7[%237, %c0_84] : memref<16x128xf32, #tpu.memory_space<vmem>>, vector<1x128xf32>
    %c7_85 = arith.constant 7 : index
    %c0_86 = arith.constant 0 : index
    %239 = vector.load %arg6[%c7_85, %c0_86] : memref<8x128xf32, #tpu.memory_space<vmem>>, vector<1x128xf32>
    tpu.vector_store %arg6[%c7_85, %c0_86], %238 {strides = array<i32>} : memref<8x128xf32, #tpu.memory_space<vmem>>, vector<1x128xf32>,
    return
  }
}

</mosaic_0001>

<bundles_post_ra>
// kernel: graph_model_forward.1
= control target key start
LH: loop header
LB: loop body
LE: loop exit
PB: predicated region body
PF: predicated region fallthrough
CT: control target
= control target key end

     0   :  { %11 = vsyncpa [#allocation5], 0  ;;  %s1426_s0 = inlined_call_operand.vmem [shape: s32[8], index: 0, kind: input, shape index: {}]   ;;  %s1427_s1 = inlined_call_operand.vmem [shape: s32[16,2], index: 1, kind: input, shape index: {}]   ;;  %s1428_s2 = inlined_call_operand.vmem [shape: f32[2,5,32], index: 2, kind: input, shape index: {}]   ;;  %s1429_s3 = inlined_call_operand.vmem [shape: f32[16,16], index: 3, kind: input, shape index: {}]   ;;  %s1430_s4 = inlined_call_operand.hbm [shape: f32[4,32,128], index: 4, kind: input, shape index: {}]   ;;  %s1431_s5 = inlined_call_operand.vmem [shape: f32[3,3,32], index: 5, kind: input, shape index: {}]   ;;  %s1432_s6 = inlined_call_operand.vmem [shape: f32[8,128], index: 6, kind: output, shape index: {}]  }
   0x1   :  { %s19_s23 = sshll.u32 %s1426_s0, 4  ;;  %s20_s23 = int_to_ptr.vmem [resolvable:$true] %s19_s23 }
   0x2   :  { %12 = vsyncpa [#allocation4], 0  ;;  %s1234_s24 = scalar_lea.vmem %s20_s23, 16  ;;  %p1239_p1 = scmp.lt.s32.totalorder %s20_s23, %s20_s23 }
   0x3   :  { %p1235_p0 = scmp.ne.s32.totalorder %s20_s23, %s1234_s24  ;;  %p1240_p2 = scmp.lt.s32.totalorder %s1234_s24, %s1234_s24 }
   0x5   :  { %p1241_p3 = por %p1240_p2, %p1239_p1 }
   0x7   :  { %p1242_p4 = pnand %p1241_p3, %p1235_p0 }
   0x9   :  { %1245 = shalt.err (!%p1242_p4)
}
   0xa   :  { %s1270_s25 = smov [#allocation3]   ;;  %s1271_s26 = smov [#allocation6]  }
   0xb   :  { %22 = dma.vmem_to_smem %s20_s23, 16, %s1270_s25, [#allocation5]  }
   0xc   :  { %s34_s27 = sshll.u32 %s1271_s26, 4  ;;  %s35_s27 = int_to_ptr.vmem [resolvable:$true] %s34_s27 }
   0xd   :  { %s1254_s28 = scalar_lea.vmem %s35_s27, 2048  ;;  %p1259_p6 = scmp.lt.s32.totalorder %s35_s27, %s35_s27 }
   0xe   :  { %p1255_p5 = scmp.ne.s32.totalorder %s35_s27, %s1254_s28  ;;  %p1260_p7 = scmp.lt.s32.totalorder %s1254_s28, %s1254_s28 }
  0x10   :  { %p1261_p8 = por %p1260_p7, %p1259_p6 }
  0x12   :  { %p1262_p9 = pnand %p1261_p8, %p1255_p5 }
  0x14   :  { %1265 = shalt.err (!%p1262_p9)
}
  0x15   :  { %s1272_s0 = smov 128   ;;  %s1273_s29 = smov 8  }
  0x16   :  { %40 = dma.hbm_to_vmem [thread:$0]  %s1430_s4, 2048, %s35_s27, [#allocation4], %s1272_s0, %s1272_s0, %s1273_s29  }
  0x17   :  { %1266 = dma.done.wait [#allocation5], 16  }
  0x18   :  { %1267 = vsyncadd [#allocation5], 4294967280 }
  0x19   :  { %1268 = dma.done.wait [#allocation4], 2048  }
  0x1a   :  { %1269 = vsyncadd [#allocation4], 4294965248 }
  0x1b   :  { %49 = sfence }
  0x1c   :  { %v51_v0 = vld [vmem:[%s1427_s1 + $0x8] sm:$0xff]  ;;  %v50_v1 = vld [vmem:[%s1427_s1] sm:$0xff]  ;;  %v1274_v2 = vmov 0   ;;  %v1275_v3 = vmov 0.0   ;;  %v1276_v12 = vmov 1   ;;  %vm262_vm10 = vcmask 130048  }
  0x1d   :  { %1179 = vset.pattern.permute.xlu1 %v1274_v2  ;;  %1167 = vset.pattern.permute.xlu0 %v1274_v2  ;;  %vm56_vm0 = vcmp.eq.s32.totalorder %v51_v0, 0  ;;  %vm96_vm1 = vcmp.eq.s32.totalorder %v51_v0, 1  ;;  %vm55_vm2 = vcmp.eq.s32.totalorder %v50_v1, 0  ;;  %vm95_vm3 = vcmp.eq.s32.totalorder %v50_v1, 1  ;;  %v1327_v20 = vld [vmem:[%s1429_s3] sm:$0xff]  ;;  %v260_v21 = vld [vmem:[#allocation6 + $0x18] sm:$0xff] }
  0x1e   :  { %v1027_v4 = vsel %vm56_vm0, 1.0, %v1275_v3  ;;  %v1029_v5 = vsel %vm96_vm1, 1.0, %v1275_v3  ;;  %v1026_v6 = vsel %vm55_vm2, 1.0, %v1275_v3  ;;  %v1028_v7 = vsel %vm95_vm3, 1.0, %v1275_v3  ;;  %1099 = vmatprep.mubr.msk.f32.mxu0 %vm262_vm10, %v1327_v20  ;;  %v259_v22 = vld [vmem:[#allocation6 + $0x10] sm:$0xff]  ;;  %1102 = vmatprep.subr.mxu1 %v260_v21  ;;  %s1052_s22 = sld [smem:[#allocation3 + $0x1]] }
  0x1f   :  { %v1168_v8 = vpack.i.bf16 %v1029_v5, %v1027_v4  ;;  %v1180_v9 = vpack.i.bf16 %v1028_v7, %v1026_v6  ;;  %vm135_vm4 = vcmp.eq.s32.totalorder %v50_v1, 2  ;;  %vm136_vm5 = vcmp.eq.s32.totalorder %v51_v0, 2  ;;  %1103 = vmatpush3.msra.mxu1 %v260_v21  ;;  %v1025_v27 = vld [vmem:[%s1428_s2 + $0x8] sm:$0x1f]  ;;  %v52_v31 = vld [vmem:[%s1428_s2] sm:$0x1f] }
  0x20   :  { %v1030_v10 = vsel %vm135_vm4, 1.0, %v1275_v3  ;;  %v1031_v11 = vsel %vm136_vm5, 1.0, %v1275_v3  ;;  %vm175_vm6 = vcmp.eq.s32.totalorder %v50_v1, 3  ;;  %vm176_vm7 = vcmp.eq.s32.totalorder %v51_v0, 3  ;;  %1104 = vmatprep.subr.mxu1 %v259_v22  ;;  %s1053_s23 = sld [smem:[#allocation3 + $0x2]] }
  0x21   :  { %1169 = vperm.xlu0 %1167, %v1168_v8   ;;  %1181 = vperm.xlu1 %1179, %v1180_v9   ;;  %v1197_v13 = vpack.i.bf16 %v1030_v10, %v1031_v11  ;;  %v1032_v14 = vsel %vm175_vm6, 1.0, %v1275_v3  ;;  %v1033_v15 = vsel %vm176_vm7, 1.0, %v1275_v3  ;;  %vm215_vm8 = vcmp.eq.s32.totalorder %v50_v1, 4  ;;  %s1054_s24 = sld [smem:[#allocation3 + $0x3]] }
  0x22   :  { %vm216_vm9 = vcmp.eq.s32.totalorder %v51_v0, 4  ;;  %v1207_v16 = vpack.i.bf16 %v1032_v14, %v1033_v15  ;;  %v1034_v17 = vsel %vm215_vm8, 1.0, %v1275_v3  ;;  %1105 = vmatpush3.msra.mxu1 %v259_v22  ;;  %v71_v23 = vlaneseq  ;;  %s1055_s25 = sld [smem:[#allocation3 + $0x4]] }
  0x23   :  { %v1035_v18 = vsel %vm216_vm9, 1.0, %v1275_v3  ;;  %vm348_vm11 = vcmask 261120   ;;  %s1056_s26 = sld [smem:[#allocation3 + $0x5]] }
  0x24   :  { %v1217_v19 = vpack.i.bf16 %v1034_v17, %v1035_v18  ;;  %v72_v24 = vshrl.u32 %v71_v23, 7  ;;  %s1057_s27 = sld [smem:[#allocation3 + $0x6]]  ;;  %s984_s29 = scalar_lea.vmem [#allocation2], %s1052_s22 }
  0x25   :  { %1173 = vset.pattern.permute.xlu0 %v1276_v12  ;;  %1185 = vset.pattern.permute.xlu1 %v1276_v12  ;;  %s1058_s28 = sld [smem:[#allocation3 + $0x7]] }
  0x26   :  { %1175 = vperm.xlu0 %1173, %v1168_v8   ;;  %1187 = vperm.xlu1 %1185, %v1180_v9   ;;  %v1334_v28 = vsub.s32 0, %v72_v24  ;;  %v1336_v29 = vsub.s32 1, %v72_v24  ;;  %v1338_v30 = vsub.s32 2, %v72_v24  ;;  %v193_v35 = vsub.s32 3, %v72_v24  ;;  %s988_s30 = scalar_lea.vmem [#allocation2], %s1053_s23 }
  0x27   :  { %v233_v39 = vsub.s32 4, %v72_v24  ;;  %s992_s4 = scalar_lea.vmem [#allocation2], %s1054_s24 }
  0x28   :  { %v88_v32 = vrot.slane %v1025_v27, %v1334_v28  ;;  %v128_v36 = vrot.slane %v1025_v27, %v1336_v29  ;;  %v74_v40 = vrot.slane %v52_v31, %v1334_v28  ;;  %v114_v41 = vrot.slane %v52_v31, %v1336_v29  ;;  %s996_s12 = scalar_lea.vmem [#allocation2], %s1055_s25 }
  0x29   :  { %v168_v42 = vrot.slane %v1025_v27, %v1338_v30  ;;  %v154_v50 = vrot.slane %v52_v31, %v1338_v30  ;;  %v208_v51 = vrot.slane %v1025_v27, %v193_v35  ;;  %v194_v55 = vrot.slane %v52_v31, %v193_v35  ;;  %s1000_s13 = scalar_lea.vmem [#allocation2], %s1056_s26 }
  0x2a   :  { %1198 = vperm.xlu0 %1173, %v1197_v13   ;;  %1191 = vset.pattern.permute.xlu1 %v1274_v2  ;;  %v248_v56 = vrot.slane %v1025_v27, %v233_v39  ;;  %v234_v18 = vrot.slane %v52_v31, %v233_v39  ;;  %s1004_s18 = scalar_lea.vmem [#allocation2], %s1057_s27 }
  0x2b   :  { %1193 = vperm.xlu1 %1191, %v1197_v13   ;;  %s1008_s19 = scalar_lea.vmem [#allocation2], %s1058_s28 }
  0x2e   :  { %1208 = vperm.xlu0 %1173, %v1207_v16  }
  0x2f   :  { %1203 = vperm.xlu1 %1191, %v1207_v16  }
  0x32   :  { %1218 = vperm.xlu0 %1173, %v1217_v19  }
  0x33   :  { %1213 = vperm.xlu1 %1191, %v1217_v19  }
  0x9c   :  { %v1182_v25 = vpop.permute.xlu1 %1181  ;;  %v1170_v26 = vpop.permute.xlu0 %1169 }
  0x9d   :  { %v1172_v43 = vunpack.i.h.bf16 %v1170_v26  ;;  %v1171_v44 = vunpack.i.l.bf16 %v1170_v26  ;;  %v1184_v47 = vunpack.i.h.bf16 %v1182_v25  ;;  %v1183_v48 = vunpack.i.l.bf16 %v1182_v25 }
  0x9f   :  { %v116_v61 = vmul.f32 %v1172_v43, %v114_v41  ;;  %v76_v62 = vmul.f32 %v1171_v44, %v74_v40  ;;  %v115_v1 = vmul.f32 %v1184_v47, %v114_v41  ;;  %v75_v2 = vmul.f32 %v1183_v48, %v74_v40 }
  0xa1   :  { %v1176_v33 = vpop.permute.xlu0 %1175  ;;  %v1188_v34 = vpop.permute.xlu1 %1187 }
  0xa2   :  { %v1178_v37 = vunpack.i.h.bf16 %v1176_v33  ;;  %v1177_v38 = vunpack.i.l.bf16 %v1176_v33  ;;  %v1190_v45 = vunpack.i.h.bf16 %v1188_v34  ;;  %v1189_v46 = vunpack.i.l.bf16 %v1188_v34 }
  0xa4   :  { %v130_v52 = vmul.f32 %v1178_v37, %v128_v36  ;;  %v90_v53 = vmul.f32 %v1177_v38, %v88_v32  ;;  %v129_v63 = vmul.f32 %v1190_v45, %v128_v36  ;;  %v89_v0 = vmul.f32 %v1189_v46, %v88_v32 }
  0xa5   :  { %v1199_v49 = vpop.permute.xlu0 %1198 }
  0xa6   :  { %v1194_v54 = vpop.permute.xlu1 %1193  ;;  %v1201_v57 = vunpack.i.h.bf16 %v1199_v49  ;;  %v1200_v58 = vunpack.i.l.bf16 %v1199_v49  ;;  %v92_v6 = vadd.f32 %v90_v53, %v76_v62  ;;  %v132_v7 = vadd.f32 %v130_v52, %v116_v61  ;;  %v257_v52 = vld [vmem:[#allocation6] sm:$0xff] }
  0xa7   :  { %v1196_v59 = vunpack.i.h.bf16 %v1194_v54  ;;  %v1195_v60 = vunpack.i.l.bf16 %v1194_v54  ;;  %v91_v15 = vadd.f32 %v89_v0, %v75_v2  ;;  %v131_v16 = vadd.f32 %v129_v63, %v115_v1 }
  0xa8   :  { %v170_v3 = vmul.f32 %v1200_v58, %v168_v42  ;;  %v169_v11 = vmul.f32 %v1201_v57, %v168_v42  ;;  %v134_v25 = vadd.f32 %v132_v7, %v92_v6 }
  0xa9   :  { %v156_v4 = vmul.f32 %v1195_v60, %v154_v50  ;;  %v1209_v5 = vpop.permute.xlu0 %1208  ;;  %v155_v12 = vmul.f32 %v1196_v59, %v154_v50  ;;  %v133_v37 = vadd.f32 %v131_v16, %v91_v15  ;;  %v1352_v50 = vld [vmem:[%s1429_s3 + $0x8] sm:$0xff] }
  0xaa   :  { %v1211_v8 = vunpack.i.h.bf16 %v1209_v5  ;;  %v1210_v9 = vunpack.i.l.bf16 %v1209_v5  ;;  %v1204_v10 = vpop.permute.xlu1 %1203 }
  0xab   :  { %v1206_v13 = vunpack.i.h.bf16 %v1204_v10  ;;  %v1205_v14 = vunpack.i.l.bf16 %v1204_v10  ;;  %v172_v19 = vadd.f32 %v170_v3, %v156_v4  ;;  %v171_v33 = vadd.f32 %v169_v11, %v155_v12 }
  0xac   :  { %v210_v17 = vmul.f32 %v1210_v9, %v208_v51  ;;  %v209_v21 = vmul.f32 %v1211_v8, %v208_v51  ;;  %v258_v51 = vld [vmem:[#allocation6 + $0x8] sm:$0xff] }
  0xad   :  { %v195_v22 = vmul.f32 %v1206_v13, %v194_v55  ;;  %v196_v23 = vmul.f32 %v1205_v14, %v194_v55  ;;  %v1219_v24 = vpop.permute.xlu0 %1218  ;;  %v174_v41 = vadd.f32 %v172_v19, %v134_v25  ;;  %v173_v39 = vadd.f32 %v171_v33, %v133_v37  ;;  %1106 = vmatprep.subr.mxu1 %v258_v51  ;;  %v261_v55 = vld [vmem:[%s1431_s5] sm:$0x7]  ;;  %v477_v33 = vld [vmem:[#allocation6 + $0x38] sm:$0xff] }
  0xae   :  { %v1221_v26 = vunpack.i.h.bf16 %v1219_v24  ;;  %v1220_v27 = vunpack.i.l.bf16 %v1219_v24  ;;  %v1214_v32 = vpop.permute.xlu1 %1213  ;;  %1107 = vmatpush3.msra.mxu1 %v258_v51 }
  0xaf   :  { %v212_v34 = vadd.f32 %v210_v17, %v196_v23  ;;  %v1216_v35 = vunpack.i.h.bf16 %v1214_v32  ;;  %v1215_v36 = vunpack.i.l.bf16 %v1214_v32  ;;  %v211_v42 = vadd.f32 %v209_v21, %v195_v22  ;;  %1108 = vmatprep.subr.mxu1 %v257_v52 }
  0xb0   :  { %v249_v38 = vmul.f32 %v1221_v26, %v248_v56  ;;  %v250_v40 = vmul.f32 %v1220_v27, %v248_v56  ;;  %1109 = vmatpush3.msra.mxu1 %v257_v52  ;;  %v347_v56 = vrot.slane %v261_v55, %v1334_v28  ;;  %v470_v22 = vrot.slane %v261_v55, %v1338_v30 }
  0xb1   :  { %v235_v43 = vmul.f32 %v1216_v35, %v234_v18  ;;  %v236_v31 = vmul.f32 %v1215_v36, %v234_v18  ;;  %v214_v46 = vadd.f32 %v212_v34, %v174_v41  ;;  %v213_v48 = vadd.f32 %v211_v42, %v173_v39  ;;  %v476_v34 = vld [vmem:[#allocation6 + $0x30] sm:$0xff]  ;;  %v475_v35 = vld [vmem:[#allocation6 + $0x28] sm:$0xff]  ;;  %v474_v36 = vld [vmem:[#allocation6 + $0x20] sm:$0xff] }
  0xb2   :  { %v464_v18 = vrot.slane %v261_v55, %v1336_v29 }
  0xb3   :  { %v251_v44 = vadd.f32 %v249_v38, %v235_v43  ;;  %v252_v45 = vadd.f32 %v250_v40, %v236_v31  ;;  %v1040_v40 = vld [vmem:[%s1431_s5 + $0x4] sm:$0x7] }
  0xb4   :  { %v558_v41 = vrot.slane %v1040_v40, %v1334_v28 }
  0xb5   :  { %v254_v47 = vadd.f32 %v252_v45, %v214_v46  ;;  %v253_v49 = vadd.f32 %v251_v44, %v213_v48 }
  0xb7   :  { %1095 = vmatprep.subr.mxu0 %v254_v47 }
  0xb8   :  { %1096 = vmatpush3.msra.mxu0 %v254_v47 }
  0xb9   :  { %1097 = vmatprep.subr.mxu0 %v253_v49 }
  0xba   :  { %1098 = vmatpush3.msra.mxu0 %v253_v49 }
  0xbb   :  { %1100 = vmatmul.mubr.msk.f32.vlgmr.msra.gmra.mxu0 %vm262_vm10, %v1352_v50 }
  0xbc   :  { %1117 = vmatprep.mubr.msk.f32.mxu0 %vm262_vm10, %v1327_v20 }
 0x17b   :  { %v1101_v53 = vpop.f32.mrf.mxu0 }
 0x17d   :  { %v335_v54 = vpop.f32.mrf.mxu0 }
 0x17e   :  { %1110 = vmatprep.mubr.msk.f32.mxu1 %vm348_vm11, %v335_v54 }
 0x17f   :  { %1111 = vmatmul.mubr.msk.f32.vlgmr.msra.gmra.mxu1 %vm348_vm11, %v1101_v53 }
 0x180   :  { %1135 = vmatprep.mubr.msk.f32.mxu1 %vm262_vm10, %v1327_v20 }
 0x23f   :  { %v1112_v57 = vpop.f32.mrf.mxu1 }
 0x240   :  { %v427_v58 = vadd.f32 %v1112_v57, %v347_v56 }
 0x241   :  { %v421_v59 = vpop.f32.mrf.mxu1 }
 0x242   :  { %v431_v60 = vmax.f32 %v427_v58, 0.0  ;;  %v422_v61 = vadd.f32 %v421_v59, %v347_v56 }
 0x244   :  { %v430_v62 = vmax.f32 %v422_v61, 0.0  ;;  %v433_v63 = vadd.f32 %v431_v60, %v254_v47 }
 0x246   :  { %v437_v0 = vsel %vm348_vm11, %v433_v63, 0.0  ;;  %v432_v1 = vadd.f32 %v430_v62, %v253_v49 }
 0x247   :  { %438 = vadd.xlane.f32.xlu1 %v437_v0 }
 0x248   :  { %v434_v2 = vsel %vm348_vm11, %v432_v1, 0.0 }
 0x249   :  { %435 = vadd.xlane.f32.xlu0 %v434_v2 }
 0x2d0   :  { %v439_v20 = vpop.xlane.xlu1 %438 }
 0x2d1   :  { %v442_v3 = vmul.f32 0.03125, %v439_v20  ;;  %v673_v20 = vrot.slane %v1040_v40, %v1336_v29 }
 0x2d2   :  { %v436_v4 = vpop.xlane.xlu0 %435 }
 0x2d3   :  { %v444_v5 = vsub.f32 %v433_v63, %v442_v3  ;;  %v441_v6 = vmul.f32 0.03125, %v436_v4 }
 0x2d5   :  { %v443_v7 = vsub.f32 %v432_v1, %v441_v6  ;;  %v446_v8 = vmul.f32 %v444_v5, %v444_v5 }
 0x2d7   :  { %v450_v9 = vsel %vm348_vm11, %v446_v8, 0.0  ;;  %v445_v10 = vmul.f32 %v443_v7, %v443_v7 }
 0x2d8   :  { %451 = vadd.xlane.f32.xlu0 %v450_v9 }
 0x2d9   :  { %v447_v11 = vsel %vm348_vm11, %v445_v10, 0.0 }
 0x2da   :  { %448 = vadd.xlane.f32.xlu1 %v447_v11 }
 0x361   :  { %v452_v12 = vpop.xlane.xlu0 %451 }
 0x362   :  { %v454_v13 = vmul.f32 0.03125, %v452_v12  ;;  %v686_v12 = vld [vmem:[#allocation6 + $0x58] sm:$0xff] }
 0x363   :  { %v449_v14 = vpop.xlane.xlu1 %448 }
 0x364   :  { %v456_v15 = vadd.f32 1e-05, %v454_v13  ;;  %v453_v16 = vmul.f32 0.03125, %v449_v14  ;;  %v685_v13 = vld [vmem:[#allocation6 + $0x50] sm:$0xff]  ;;  %v684_v14 = vld [vmem:[#allocation6 + $0x48] sm:$0xff] }
 0x366   :  { %1222 = vrsqrt.f32 %v456_v15  ;;  %v455_v17 = vadd.f32 1e-05, %v453_v16  ;;  %v683_v15 = vld [vmem:[#allocation6 + $0x40] sm:$0xff] }
 0x368   :  { %1224 = vrsqrt.f32 %v455_v17 }
 0x373   :  { %v1223_v19 = vpop.eup %1222 }
 0x374   :  { %v460_v21 = vmul.f32 %v1223_v19, %v444_v5  ;;  %v679_v5 = vrot.slane %v1040_v40, %v1338_v30 }
 0x375   :  { %v1225_v23 = vpop.eup %1224 }
 0x376   :  { %v466_v24 = vmul.f32 %v464_v18, %v460_v21  ;;  %v459_v25 = vmul.f32 %v1225_v23, %v443_v7 }
 0x378   :  { %v472_v26 = vadd.f32 %v470_v22, %v466_v24  ;;  %v465_v27 = vmul.f32 %v464_v18, %v459_v25 }
 0x37a   :  { %1113 = vmatprep.subr.mxu0 %v472_v26  ;;  %v471_v32 = vadd.f32 %v470_v22, %v465_v27 }
 0x37b   :  { %1114 = vmatpush3.msra.mxu0 %v472_v26 }
 0x37c   :  { %1115 = vmatprep.subr.mxu0 %v471_v32 }
 0x37d   :  { %1116 = vmatpush3.msra.mxu0 %v471_v32 }
 0x37e   :  { %1118 = vmatmul.mubr.msk.f32.vlgmr.msra.gmra.mxu0 %vm262_vm10, %v1352_v50  ;;  %1120 = vmatprep.subr.mxu0 %v477_v33 }
 0x37f   :  { %1121 = vmatpush3.msra.mxu0 %v477_v33 }
 0x380   :  { %1122 = vmatprep.subr.mxu0 %v476_v34 }
 0x381   :  { %1123 = vmatpush3.msra.mxu0 %v476_v34 }
 0x382   :  { %1124 = vmatprep.subr.mxu0 %v475_v35 }
 0x383   :  { %1125 = vmatpush3.msra.mxu0 %v475_v35 }
 0x384   :  { %1126 = vmatprep.subr.mxu0 %v474_v36 }
 0x385   :  { %1127 = vmatpush3.msra.mxu0 %v474_v36 }
 0x43e   :  { %v1119_v37 = vpop.f32.mrf.mxu0 }
 0x440   :  { %v546_v38 = vpop.f32.mrf.mxu0 }
 0x441   :  { %1128 = vmatprep.mubr.msk.f32.mxu0 %vm348_vm11, %v546_v38 }
 0x442   :  { %1129 = vmatmul.mubr.msk.f32.vlgmr.msra.gmra.mxu0 %vm348_vm11, %v1119_v37 }
 0x502   :  { %v1130_v42 = vpop.f32.mrf.mxu0 }
 0x503   :  { %v637_v43 = vadd.f32 %v1130_v42, %v558_v41 }
 0x504   :  { %v631_v31 = vpop.f32.mrf.mxu0 }
 0x505   :  { %v641_v39 = vmax.f32 %v637_v43, 0.0  ;;  %v632_v44 = vadd.f32 %v631_v31, %v558_v41  ;;  %v895_v31 = vld [vmem:[#allocation6 + $0x78] sm:$0xff] }
 0x506   :  { %1149 = vmatprep.subr.mxu0 %v895_v31 }
 0x507   :  { %v640_v45 = vmax.f32 %v632_v44, 0.0  ;;  %v643_v46 = vadd.f32 %v641_v39, %v472_v26  ;;  %v894_v39 = vld [vmem:[#allocation6 + $0x70] sm:$0xff]  ;;  %1150 = vmatpush3.msra.mxu0 %v895_v31  ;;  %v893_v44 = vld [vmem:[#allocation6 + $0x68] sm:$0xff] }
 0x508   :  { %1151 = vmatprep.subr.mxu0 %v894_v39 }
 0x509   :  { %v647_v47 = vsel %vm348_vm11, %v643_v46, 0.0  ;;  %v642_v48 = vadd.f32 %v640_v45, %v471_v32  ;;  %1152 = vmatpush3.msra.mxu0 %v894_v39  ;;  %v892_v45 = vld [vmem:[#allocation6 + $0x60] sm:$0xff] }
 0x50a   :  { %648 = vadd.xlane.f32.xlu0 %v647_v47  ;;  %1153 = vmatprep.subr.mxu0 %v893_v44 }
 0x50b   :  { %v644_v49 = vsel %vm348_vm11, %v642_v48, 0.0  ;;  %1154 = vmatpush3.msra.mxu0 %v893_v44 }
 0x50c   :  { %645 = vadd.xlane.f32.xlu1 %v644_v49  ;;  %1155 = vmatprep.subr.mxu0 %v892_v45 }
 0x50d   :  { %1156 = vmatpush3.msra.mxu0 %v892_v45 }
 0x593   :  { %v649_v51 = vpop.xlane.xlu0 %648 }
 0x594   :  { %v651_v52 = vmul.f32 0.03125, %v649_v51 }
 0x595   :  { %v646_v53 = vpop.xlane.xlu1 %645 }
 0x596   :  { %v653_v54 = vsub.f32 %v643_v46, %v651_v52  ;;  %v650_v55 = vmul.f32 0.03125, %v646_v53 }
 0x598   :  { %v652_v56 = vsub.f32 %v642_v48, %v650_v55  ;;  %v655_v57 = vmul.f32 %v653_v54, %v653_v54 }
 0x59a   :  { %v659_v58 = vsel %vm348_vm11, %v655_v57, 0.0  ;;  %v654_v59 = vmul.f32 %v652_v56, %v652_v56 }
 0x59b   :  { %660 = vadd.xlane.f32.xlu0 %v659_v58 }
 0x59c   :  { %v656_v60 = vsel %vm348_vm11, %v654_v59, 0.0 }
 0x59d   :  { %657 = vadd.xlane.f32.xlu1 %v656_v60 }
 0x624   :  { %v661_v61 = vpop.xlane.xlu0 %660 }
 0x625   :  { %v663_v62 = vmul.f32 0.03125, %v661_v61 }
 0x626   :  { %v658_v63 = vpop.xlane.xlu1 %657 }
 0x627   :  { %v665_v0 = vadd.f32 1e-05, %v663_v62  ;;  %v662_v1 = vmul.f32 0.03125, %v658_v63 }
 0x629   :  { %1226 = vrsqrt.f32 %v665_v0  ;;  %v664_v2 = vadd.f32 1e-05, %v662_v1 }
 0x62b   :  { %1228 = vrsqrt.f32 %v664_v2 }
 0x636   :  { %v1227_v3 = vpop.eup %1226 }
 0x637   :  { %v669_v4 = vmul.f32 %v1227_v3, %v653_v54 }
 0x638   :  { %v1229_v6 = vpop.eup %1228 }
 0x639   :  { %v675_v7 = vmul.f32 %v673_v20, %v669_v4  ;;  %v668_v8 = vmul.f32 %v1229_v6, %v652_v56 }
 0x63b   :  { %v681_v9 = vadd.f32 %v679_v5, %v675_v7  ;;  %v674_v10 = vmul.f32 %v673_v20, %v668_v8 }
 0x63d   :  { %1131 = vmatprep.subr.mxu1 %v681_v9  ;;  %v680_v11 = vadd.f32 %v679_v5, %v674_v10 }
 0x63e   :  { %1132 = vmatpush3.msra.mxu1 %v681_v9 }
 0x63f   :  { %1133 = vmatprep.subr.mxu1 %v680_v11 }
 0x640   :  { %1134 = vmatpush3.msra.mxu1 %v680_v11 }
 0x641   :  { %1136 = vmatmul.mubr.msk.f32.vlgmr.msra.gmra.mxu1 %vm262_vm10, %v1352_v50  ;;  %1138 = vmatprep.subr.mxu1 %v686_v12  ;;  %v1045_v50 = vld [vmem:[%s1431_s5 + $0x8] sm:$0x7]  ;;  %s979_s5 = sld [smem:[#allocation3]] }
 0x642   :  { %1139 = vmatpush3.msra.mxu1 %v686_v12  ;;  %v767_v18 = vrot.slane %v1045_v50, %v1334_v28  ;;  %v882_v54 = vrot.slane %v1045_v50, %v1336_v29  ;;  %v888_v58 = vrot.slane %v1045_v50, %v1338_v30 }
 0x643   :  { %1140 = vmatprep.subr.mxu1 %v685_v13 }
 0x644   :  { %1141 = vmatpush3.msra.mxu1 %v685_v13 }
 0x645   :  { %1142 = vmatprep.subr.mxu1 %v684_v14 }
 0x646   :  { %1143 = vmatpush3.msra.mxu1 %v684_v14 }
 0x647   :  { %1144 = vmatprep.subr.mxu1 %v683_v15  ;;  %s980_s0 = scalar_lea.vmem [#allocation2], %s979_s5 }
 0x648   :  { %1145 = vmatpush3.msra.mxu1 %v683_v15 }
 0x701   :  { %v1137_v16 = vpop.f32.mrf.mxu1 }
 0x703   :  { %v755_v17 = vpop.f32.mrf.mxu1 }
 0x704   :  { %1146 = vmatprep.mubr.msk.f32.mxu1 %vm348_vm11, %v755_v17 }
 0x705   :  { %1147 = vmatmul.mubr.msk.f32.vlgmr.msra.gmra.mxu1 %vm348_vm11, %v1137_v16 }
 0x7c5   :  { %v1148_v19 = vpop.f32.mrf.mxu1 }
 0x7c6   :  { %v846_v21 = vadd.f32 %v1148_v19, %v767_v18 }
 0x7c7   :  { %v840_v22 = vpop.f32.mrf.mxu1 }
 0x7c8   :  { %v850_v23 = vmax.f32 %v846_v21, 0.0  ;;  %v841_v24 = vadd.f32 %v840_v22, %v767_v18 }
 0x7ca   :  { %v849_v25 = vmax.f32 %v841_v24, 0.0  ;;  %v852_v26 = vadd.f32 %v850_v23, %v681_v9 }
 0x7cc   :  { %v856_v27 = vsel %vm348_vm11, %v852_v26, 0.0  ;;  %v851_v32 = vadd.f32 %v849_v25, %v680_v11 }
 0x7cd   :  { %857 = vadd.xlane.f32.xlu1 %v856_v27 }
 0x7ce   :  { %v853_v33 = vsel %vm348_vm11, %v851_v32, 0.0 }
 0x7cf   :  { %854 = vadd.xlane.f32.xlu0 %v853_v33 }
 0x856   :  { %v858_v34 = vpop.xlane.xlu1 %857 }
 0x857   :  { %v860_v35 = vmul.f32 0.03125, %v858_v34 }
 0x858   :  { %v855_v36 = vpop.xlane.xlu0 %854 }
 0x859   :  { %v862_v37 = vsub.f32 %v852_v26, %v860_v35  ;;  %v859_v38 = vmul.f32 0.03125, %v855_v36 }
 0x85b   :  { %v861_v28 = vsub.f32 %v851_v32, %v859_v38  ;;  %v864_v40 = vmul.f32 %v862_v37, %v862_v37 }
 0x85d   :  { %v868_v41 = vsel %vm348_vm11, %v864_v40, 0.0  ;;  %v863_v42 = vmul.f32 %v861_v28, %v861_v28 }
 0x85e   :  { %869 = vadd.xlane.f32.xlu1 %v868_v41 }
 0x85f   :  { %v865_v43 = vsel %vm348_vm11, %v863_v42, 0.0 }
 0x860   :  { %866 = vadd.xlane.f32.xlu0 %v865_v43 }
 0x8e7   :  { %v870_v46 = vpop.xlane.xlu1 %869 }
 0x8e8   :  { %v872_v47 = vmul.f32 0.03125, %v870_v46 }
 0x8e9   :  { %v867_v48 = vpop.xlane.xlu0 %866 }
 0x8ea   :  { %v874_v49 = vadd.f32 1e-05, %v872_v47  ;;  %v871_v51 = vmul.f32 0.03125, %v867_v48 }
 0x8ec   :  { %1230 = vrsqrt.f32 %v874_v49  ;;  %v873_v52 = vadd.f32 1e-05, %v871_v51 }
 0x8ee   :  { %1232 = vrsqrt.f32 %v873_v52 }
 0x8f9   :  { %v1231_v53 = vpop.eup %1230 }
 0x8fa   :  { %v878_v55 = vmul.f32 %v1231_v53, %v862_v37 }
 0x8fb   :  { %v1233_v56 = vpop.eup %1232 }
 0x8fc   :  { %v877_v57 = vmul.f32 %v1233_v56, %v861_v28  ;;  %v884_v59 = vmul.f32 %v882_v54, %v878_v55 }
 0x8fe   :  { %v883_v60 = vmul.f32 %v882_v54, %v877_v57  ;;  %v890_v62 = vadd.f32 %v888_v58, %v884_v59 }
 0x900   :  { %v889_v61 = vadd.f32 %v888_v58, %v883_v60 }
 0x902   :  { %1157 = vmatprep.mubr.msk.f32.mxu0 %vm348_vm11, %v889_v61 }
 0x903   :  { %1158 = vmatmul.mubr.msk.f32.vlgmr.msra.gmra.mxu0 %vm348_vm11, %v890_v62 }
 0x9c3   :  { %v1159_v29 = vpop.f32.mrf.mxu0 }
 0x9c4   :  { %978 = vst [vmem:[#allocation2 + $0x8] sm:$0xff] %v1159_v29 }
 0x9c5   :  { %v968_v63 = vpop.f32.mrf.mxu0 }
 0x9c6   :  { %977 = vst [vmem:[#allocation2] sm:$0xff] %v968_v63 }
 0x9cd   :  { %v981_v30 = vld [vmem:[%s980_s0] sm:$0x1] }
 0x9ce   :  { %v985_v0 = vld [vmem:[%s984_s29] sm:$0x1]  ;;  %982 = vst [vmem:[%s1432_s6] sm:$0x1] %v981_v30 }
 0x9cf   :  { %v989_v1 = vld [vmem:[%s988_s30] sm:$0x1]  ;;  %986 = vst [vmem:[%s1432_s6 + $0x1] sm:$0x1] %v985_v0 }
 0x9d0   :  { %990 = vst [vmem:[%s1432_s6 + $0x2] sm:$0x1] %v989_v1  ;;  %v993_v2 = vld [vmem:[%s992_s4] sm:$0x1] }
 0x9d1   :  { %v997_v20 = vld [vmem:[%s996_s12] sm:$0x1]  ;;  %994 = vst [vmem:[%s1432_s6 + $0x3] sm:$0x1] %v993_v2 }
 0x9d2   :  { %v1001_v3 = vld [vmem:[%s1000_s13] sm:$0x1]  ;;  %998 = vst [vmem:[%s1432_s6 + $0x4] sm:$0x1] %v997_v20 }
 0x9d3   :  { %1002 = vst [vmem:[%s1432_s6 + $0x5] sm:$0x1] %v1001_v3  ;;  %v1005_v4 = vld [vmem:[%s1004_s18] sm:$0x1] }
 0x9d4   :  { %v1009_v5 = vld [vmem:[%s1008_s19] sm:$0x1]  ;;  %1006 = vst [vmem:[%s1432_s6 + $0x6] sm:$0x1] %v1005_v4 }
 0x9d5   :  { %1010 = vst [vmem:[%s1432_s6 + $0x7] sm:$0x1] %v1009_v5 }
 0x9d6   :  { %1015 = vsyncpa [#allocation4], 1 }
 0x9d7   :  { %1016 = vsyncpa [#allocation5], 1 }

</bundles_post_ra>
